<compile_context>
chip_gen: v6e
topology: v6e:2x2x1
jax: 0.10.0
libtpu: 0.0.40
codegen_flags: <defaults>
</compile_context>

<pallas_src>
import math
import jax
import jax.numpy as jnp
from jax import lax
from jax.experimental import pallas as pl
from jax.experimental.pallas import tpu as pltpu


# ------------------------------------------------------------------ constants / helpers

VMEM_LIMIT = 48 * 1024 * 1024                 # <= 64 MiB so it is valid on v7x as well
BN_SCALE = 1.0 / math.sqrt(1.0 + 1e-5)        # eval-mode BatchNorm with default stats
_GELU_C = math.sqrt(2.0 / math.pi)


def _gelu(x):
    # tanh-approx GELU (EUP-friendly inside kernels; used in XLA glue too for consistency)
    return 0.5 * x * (1.0 + jnp.tanh(_GELU_C * (x + 0.044715 * x * x * x)))


def _silu(x):
    return x * (1.0 / (1.0 + jnp.exp(-x)))


def _apply_act(x, act):
    if act == 'gelu':
        return _gelu(x)
    if act == 'silu':
        return _silu(x)
    return x


def _cout_tile(c):
    """Largest multiple-of-8 divisor of c giving >=2 tiles (tile<=512); else the full dim."""
    best = None
    t = 8
    limit = min(512, c // 2)
    while t <= limit:
        if c % t == 0:
            best = t
        t += 8
    return best if best is not None else c


def _c1_tiling(c1):
    """Tiling of the fused-stack hidden dim: (padded_c1, tile)."""
    if c1 <= 512:
        return c1, c1                     # full block, no padding needed
    c1p = ((c1 + 127) // 128) * 128       # last dim of W2 blocks must be 128-aligned
    tc1 = 128
    t = 128
    while t <= 512:
        if c1p % t == 0:
            tc1 = t
        t += 128
    return c1p, tc1


# ------------------------------------------------------------------ Pallas kernels

def _make_matmul_kernel(act):
    def kernel(w_ref, b_ref, x_ref, o_ref):
        # w: [TCO, Cin] bf16, b: [TCO, 1] f32, x: [Cin, M] bf16 -> o: [TCO, M] f32
        y = jnp.dot(w_ref[...], x_ref[...], preferred_element_type=jnp.float32)
        o_ref[...] = _apply_act(y + b_ref[...], act)
    return kernel


def matmul_act(x2d, w, b, act='none', scale=None):
    """y = act(scale * (w @ x + b)); x2d [Cin, M] -> [Cout, M] float32 (bf16 MXU operands)."""
    Cin, M = x2d.shape
    Cout = w.shape[0]
    if scale is not None:
        w = w * scale
        b = b * scale
    tco = _cout_tile(Cout)
    return pl.pallas_call(
        _make_matmul_kernel(act),
        out_shape=jax.ShapeDtypeStruct((Cout, M), jnp.float32),
        grid=(Cout // tco,),
        in_specs=[
            pl.BlockSpec((tco, Cin), lambda co: (co, 0)),
            pl.BlockSpec((tco, 1), lambda co: (co, 0)),
            pl.BlockSpec((Cin, M), lambda co: (0, 0)),
        ],
        out_specs=pl.BlockSpec((tco, M), lambda co: (co, 0)),
        compiler_params=pltpu.CompilerParams(
            dimension_semantics=("parallel",),
            vmem_limit_bytes=VMEM_LIMIT),
    )(w.astype(jnp.bfloat16),
      jnp.asarray(b, jnp.float32).reshape(-1, 1),
      x2d.astype(jnp.bfloat16))


def _make_fused2_kernel(act1, act2):
    def kernel(w1_ref, b1_ref, w2_ref, b2_ref, x_ref, o_ref, acc_ref):
        k = pl.program_id(1)

        @pl.when(k == 0)
        def _():
            acc_ref[...] = jnp.zeros_like(acc_ref)

        h = jnp.dot(w1_ref[...], x_ref[...], preferred_element_type=jnp.float32)
        h = _apply_act(h + b1_ref[...], act1)                       # hidden stays in VMEM
        acc_ref[...] += jnp.dot(w2_ref[...], h.astype(jnp.bfloat16),
                                preferred_element_type=jnp.float32)

        @pl.when(k == pl.num_programs(1) - 1)
        def _():
            o_ref[...] = _apply_act(acc_ref[...] + b2_ref[...], act2)
    return kernel


def fused_fc2(x2d, layer1, layer2):
    """Two fused 1x1-conv layers: each layer is (w, b, bn_scale_or_None, act).
    x2d [C0, M] -> [C2, M] float32; the intermediate activation never touches HBM."""
    (w1, b1, s1, act1) = layer1
    (w2, b2, s2, act2) = layer2
    C0, M = x2d.shape
    C1 = w1.shape[0]
    C2 = w2.shape[0]
    if s1 is not None:
        w1 = w1 * s1
        b1 = b1 * s1
    if s2 is not None:
        w2 = w2 * s2
        b2 = b2 * s2
    c1p, tc1 = _c1_tiling(C1)
    if c1p != C1:
        # zero padding of the hidden dim is exact: padded rows produce act(0)=0 and the
        # matching W2 columns are zero as well.
        w1 = jnp.pad(w1, ((0, c1p - C1), (0, 0)))
        b1 = jnp.pad(b1, (0, c1p - C1))
        w2 = jnp.pad(w2, ((0, 0), (0, c1p - C1)))
    tc2 = _cout_tile(C2)
    grid = (C2 // tc2, c1p // tc1)
    return pl.pallas_call(
        _make_fused2_kernel(act1, act2),
        out_shape=jax.ShapeDtypeStruct((C2, M), jnp.float32),
        grid=grid,
        in_specs=[
            pl.BlockSpec((tc1, C0), lambda j, k: (k, 0)),
            pl.BlockSpec((tc1, 1), lambda j, k: (k, 0)),
            pl.BlockSpec((tc2, tc1), lambda j, k: (j, k)),
            pl.BlockSpec((tc2, 1), lambda j, k: (j, 0)),
            pl.BlockSpec((C0, M), lambda j, k: (0, 0)),
        ],
        out_specs=pl.BlockSpec((tc2, M), lambda j, k: (j, 0)),
        scratch_shapes=[pltpu.VMEM((tc2, M), jnp.float32)],
        compiler_params=pltpu.CompilerParams(
            dimension_semantics=("parallel", "arbitrary"),
            vmem_limit_bytes=VMEM_LIMIT),
    )(w1.astype(jnp.bfloat16),
      jnp.asarray(b1, jnp.float32).reshape(-1, 1),
      w2.astype(jnp.bfloat16),
      jnp.asarray(b2, jnp.float32).reshape(-1, 1),
      x2d.astype(jnp.bfloat16))


def _pdist_kernel(xt_ref, x_ref, o_ref):
    # xt: [N, C], x: [C, N] -> negative squared pairwise distances [N, N]
    xt = xt_ref[...]
    x = x_ref[...]
    inner = jnp.dot(xt, x, preferred_element_type=jnp.float32)     # [N, N]
    xx_col = jnp.sum(x * x, axis=0, keepdims=True)                 # [1, N] (sublane reduce)
    xx_row = jnp.sum(xt * xt, axis=1, keepdims=True)               # [N, 1]
    o_ref[...] = 2.0 * inner - xx_col - xx_row


def pairwise_neg_dist(x):
    """x [B, C, N] -> [B, N, N] of -||xi - xj||^2 (as in knn())."""
    x = x.astype(jnp.float32)
    B, C, N = x.shape
    xt = jnp.transpose(x, (0, 2, 1))
    return pl.pallas_call(
        _pdist_kernel,
        out_shape=jax.ShapeDtypeStruct((B, N, N), jnp.float32),
        grid=(B,),
        in_specs=[
            pl.BlockSpec((None, N, C), lambda bb: (bb, 0, 0)),
            pl.BlockSpec((None, C, N), lambda bb: (bb, 0, 0)),
        ],
        out_specs=pl.BlockSpec((None, N, N), lambda bb: (bb, 0, 0)),
        compiler_params=pltpu.CompilerParams(
            dimension_semantics=("parallel",),
            vmem_limit_bytes=VMEM_LIMIT),
    )(xt, x)


# ------------------------------------------------------------------ batch-folded wrappers

def _to2d(x):
    # [B, C, N] -> [C, B*N]: batch folded into lanes (lane-dense stores, weights streamed once)
    B, C, N = x.shape
    return jnp.transpose(x, (1, 0, 2)).reshape(C, B * N), B, N


def _from2d(y, B, N):
    C = y.shape[0]
    return jnp.transpose(y.reshape(C, B, N), (1, 0, 2))


def pw_conv(x, w, b, act='none', scale=None):
    """Pointwise conv: x [B, Cin, N] -> [B, Cout, N], with fused bias/BN-scale/activation."""
    x2d, B, N = _to2d(x)
    y = matmul_act(x2d, w, b, act=act, scale=scale)
    return _from2d(y, B, N)


def fc2_conv(x, layer1, layer2):
    """Two fused pointwise-conv layers on x [B, Cin, N]."""
    x2d, B, N = _to2d(x)
    y = fused_fc2(x2d, layer1, layer2)
    return _from2d(y, B, N)


# ------------------------------------------------------------------ small JAX glue

def bn(x):
    return x * BN_SCALE


def gelu(x):
    return _gelu(x)


def silu(x):
    return _silu(x)


def linear(x, w, b):
    """x [B, K], w [out, K], b [out] -> [B, out]. B=2: plain XLA dot, not worth a launch."""
    return jnp.dot(x, w.T) + b


def knn_idx(x, k):
    pd = pairwise_neg_dist(x)
    return lax.top_k(pd, k)[1]           # [B, N, k]


def get_graph_feature(x, k):
    """x [B, C, N] -> [B, 2C, N, k]  (DGCNN edge features)."""
    B, C, N = x.shape
    idx = knn_idx(x, k)
    xt = jnp.transpose(x, (0, 2, 1))                               # [B, N, C]
    feat = jax.vmap(lambda xt_b, idx_b: xt_b[idx_b])(xt, idx)      # [B, N, k, C]
    center = jnp.broadcast_to(xt[:, :, None, :], feat.shape)
    out = jnp.concatenate([feat - center, center], axis=3)         # [B, N, k, 2C]
    return jnp.transpose(out, (0, 3, 1, 2))


# ------------------------------------------------------------------ parameters

class ParamGen:
    def __init__(self, seed=0):
        self.key = jax.random.PRNGKey(seed)

    def _next(self):
        self.key, k = jax.random.split(self.key)
        return k

    def conv(self, cin, cout):
        w = jax.random.normal(self._next(), (cout, cin), jnp.float32) / math.sqrt(cin)
        b = jnp.zeros((cout,), jnp.float32)
        return (w, b)


def make_fc(pg, channels):
    return [pg.conv(channels[i], channels[i + 1]) for i in range(len(channels) - 1)]


def apply_fc_conv(layers, x, final_proc):
    """full_connected_conv1d/2d (kernel 1) with BN+GELU folded into the Pallas kernels."""
    n = len(layers)
    if n == 2:
        (w1, b1), (w2, b2) = layers
        l1 = (w1, b1, BN_SCALE, 'gelu')
        l2 = (w2, b2, BN_SCALE, 'gelu') if final_proc else (w2, b2, None, 'none')
        return fc2_conv(x, l1, l2)
    # generic fallback (unused in this configuration)
    for i, (w, b) in enumerate(layers):
        if i < n - 1 or final_proc:
            x = pw_conv(x, w, b, act='gelu', scale=BN_SCALE)
        else:
            x = pw_conv(x, w, b, act='none')
    return x


def apply_fc_linear(layers, x, final_proc):
    n = len(layers)
    for i, (w, b) in enumerate(layers):
        x = linear(x, w, b)
        if i < n - 1 or final_proc:
            x = gelu(bn(x))
    return x


# ------------------------------------------------------------------ GCN encoder

def gcn_dims(emb_in, emb_out):
    emb_inc = (emb_out / (4 * emb_in)) ** 0.25
    l1_0 = emb_in * 2
    l1_1 = int(l1_0 * emb_inc)
    l1_2 = int(l1_0 * emb_inc ** 2)
    l2_0 = l1_2 * 2
    l2_1 = int(l2_0 * emb_inc)
    l2_2 = emb_out
    l3_0 = l2_2 + l1_2
    l3_1 = int((emb_out / l3_0) ** 0.5 * l3_0)
    l3_2 = emb_out
    return [l1_0, l1_1, l1_2], [l2_0, l2_1, l2_2], [l3_0, l3_1, l3_2]


def make_gcn(pg, emb_in, emb_out):
    c1, c2, c3 = gcn_dims(emb_in, emb_out)
    return dict(conv1=make_fc(pg, c1), conv2=make_fc(pg, c2), conv3=make_fc(pg, c3))


def apply_gcn(p, x, k):
    B, C, N = x.shape
    f = get_graph_feature(x, k)                    # [B, 2C, N, k]
    f = f.reshape(B, f.shape[1], N * k)
    f = apply_fc_conv(p['conv1'], f, final_proc=True)
    x1 = f.reshape(B, f.shape[1], N, k).max(axis=-1)
    f = get_graph_feature(x1, k)
    f = f.reshape(B, f.shape[1], N * k)
    f = apply_fc_conv(p['conv2'], f, final_proc=True)
    x2 = f.reshape(B, f.shape[1], N, k).max(axis=-1)
    x3 = jnp.concatenate([x1, x2], axis=1)
    return apply_fc_conv(p['conv3'], x3, final_proc=True)


# ------------------------------------------------------------------ time blocks

def rmsnorm(x, g, dim):
    norm = jnp.sqrt(jnp.sum(x * x, axis=1, keepdims=True))
    return x / jnp.maximum(norm, 1e-12) * g * (dim ** 0.5)


def make_block(pg, dim, dim_out):
    return dict(conv=pg.conv(dim, dim_out), g=jnp.ones((1, dim_out, 1), jnp.float32),
                dim_out=dim_out)


def apply_block(p, x, scale_shift=None):
    # RMSNorm sits between conv and SiLU, so the activation is not fused here.
    x = pw_conv(x, *p['conv'], act='none')
    x = rmsnorm(x, p['g'], p['dim_out'])
    if scale_shift is not None:
        scale, shift = scale_shift
        x = x * (scale + 1.0) + shift
    return silu(x)


def make_timemerge(pg, dim_in, dim_out, time_dim):
    assert dim_in == dim_out           # res_conv is Identity in every instantiation here
    return dict(mlp=pg.conv(time_dim, dim_out * 2),
                block1=make_block(pg, dim_in, dim_out),
                block2=make_block(pg, dim_out, dim_out))


def apply_timemerge(p, x, time_emb):
    t = linear(gelu(time_emb), *p['mlp'])[:, :, None]     # [B, 2*dim_out, 1]
    scale, shift = jnp.split(t, 2, axis=1)
    h = apply_block(p['block1'], x, (scale, shift))
    h = apply_block(p['block2'], h)
    return h + x


def make_timeencode(pg, ct):
    return dict(l1=pg.conv(ct // 4, ct // 2), l2=pg.conv(ct // 2, ct), ct=ct)


def sinusoidal_pos_emb(t, dim, theta=10000):
    half = dim // 2
    freq = jnp.exp(jnp.arange(half, dtype=jnp.float32) * (-math.log(theta) / (half - 1)))
    emb = t[:, None] * freq[None, :]
    return jnp.concatenate([jnp.sin(emb), jnp.cos(emb)], axis=-1)


def apply_timeencode(p, t):
    x = sinusoidal_pos_emb(t, p['ct'] // 4)
    x = linear(x, *p['l1'])
    x = gelu(x)
    return linear(x, *p['l2'])


# ------------------------------------------------------------------ im2col convs
# TODO(synk): im2col patch extraction stays in XLA; conv matmul + BN + GELU run fused in Pallas.

def conv1x3_valid(x, w, b, act='gelu', scale=BN_SCALE):
    """Conv2d kernel (1,3), no padding (+BN+act fused). x [B,Cin,H,W] -> [B,Cout,H,W-2]."""
    B, Cin, H, W = x.shape
    Wo = W - 2
    patches = jnp.stack([x[..., 0:Wo], x[..., 1:Wo + 1], x[..., 2:Wo + 2]], axis=2)
    patches = patches.reshape(B, Cin * 3, H * Wo)
    y = pw_conv(patches, w, b, act=act, scale=scale)
    return y.reshape(B, -1, H, Wo)


def conv1x3_s2_p1(x, w, b, act='gelu', scale=BN_SCALE):
    """Conv2d (1,3), stride (1,2), padding (0,1) (+BN+act). x [B,Cin,H,W] -> [B,Cout,H,W//2]."""
    B, Cin, H, W = x.shape
    Wo = W // 2
    xp = jnp.pad(x, ((0, 0), (0, 0), (0, 0), (1, 1)))
    patches = jnp.stack([xp[..., kw::2][..., :Wo] for kw in range(3)], axis=2)
    patches = patches.reshape(B, Cin * 3, H * Wo)
    y = pw_conv(patches, w, b, act=act, scale=scale)
    return y.reshape(B, -1, H, Wo)


def conv_transpose_1x4_s2_p1(x, w, b, act='gelu', scale=BN_SCALE):
    """ConvTranspose2d (1,4), stride (1,2), padding (0,1) (+BN+act). -> [B,Cout,H,2W]."""
    B, Cin, H, W = x.shape
    Wo = 2 * W
    z = jnp.zeros((B, Cin, H, 2 * W - 1), x.dtype).at[..., ::2].set(x)
    z = jnp.pad(z, ((0, 0), (0, 0), (0, 0), (2, 2)))
    patches = jnp.stack([z[..., kw:kw + Wo] for kw in range(4)], axis=2)
    patches = patches.reshape(B, Cin * 4, H * Wo)
    y = pw_conv(patches, w, b, act=act, scale=scale)
    return y.reshape(B, -1, H, Wo)


# ------------------------------------------------------------------ SDGraph modules

def make_point_to_sparse(pg, point_dim, sparse_out, time_dim):
    mid = int((point_dim * sparse_out) ** 0.5)
    return dict(c1=pg.conv(point_dim * 3, mid),
                c2=pg.conv(mid * 3, sparse_out),
                tm=make_timemerge(pg, sparse_out, sparse_out, time_dim))


def apply_point_to_sparse(p, xy, time_emb, n_stk, n_stk_pnt):
    B, C, _ = xy.shape
    x = xy.reshape(B, C, n_stk, n_stk_pnt)
    x = conv1x3_valid(x, *p['c1'])                       # conv + BN + GELU fused
    x = conv1x3_valid(x, *p['c2'])
    x = x.max(axis=3)                                    # [B, sparse_out, n_stk]
    return apply_timemerge(p['tm'], x, time_emb)


def make_point_to_dense(pg, point_dim, emb_dim, time_dim, n_near=10):
    return dict(enc=make_gcn(pg, point_dim, emb_dim),
                tm=make_timemerge(pg, emb_dim, emb_dim, time_dim), k=n_near)


def apply_point_to_dense(p, xy, time_emb):
    d = apply_gcn(p['enc'], xy, p['k'])                  # [B, emb, n_point]
    return apply_timemerge(p['tm'], d, time_emb)


def make_sd_encoder(pg, sp_in, sp_out, dn_in, dn_out, n_stk, n_stk_pnt,
                    sp_near, dn_near, sample_type, time_dim):
    p = dict(sparse_update=make_gcn(pg, sp_in + dn_in, sp_out),
             dense_update=make_gcn(pg, dn_in + sp_in, dn_out),
             sp_near=sp_near, dn_near=dn_near, sample_type=sample_type,
             n_stk=n_stk, n_stk_pnt=n_stk_pnt,
             tm_sp=make_timemerge(pg, sp_out, sp_out, time_dim),
             tm_dn=make_timemerge(pg, dn_out, dn_out, time_dim))
    if sample_type == 'down_sample':
        p['sample'] = pg.conv(dn_out * 3, dn_out)
    elif sample_type == 'up_sample':
        p['sample'] = pg.conv(dn_out * 4, dn_out)
    return p


def apply_sd_encoder(p, sparse_fea, dense_fea, time_emb):
    B = sparse_fea.shape[0]
    n_stk, n_stk_pnt = p['n_stk'], p['n_stk_pnt']
    dense4 = dense_fea.reshape(B, dense_fea.shape[1], n_stk, n_stk_pnt)

    # dense -> sparse: max-pool each stroke, concat
    sp_from_dn = dense4.max(axis=3)
    union_sparse = jnp.concatenate([sparse_fea, sp_from_dn], axis=1)

    # sparse -> dense: broadcast stroke feature to its points, concat
    dn_from_sp = jnp.broadcast_to(sparse_fea[:, :, :, None],
                                  (B, sparse_fea.shape[1], n_stk, n_stk_pnt))
    union_dense = jnp.concatenate([dense4, dn_from_sp], axis=1)
    union_dense = union_dense.reshape(B, union_dense.shape[1], n_stk * n_stk_pnt)

    union_sparse = apply_gcn(p['sparse_update'], union_sparse, p['sp_near'])
    union_dense = apply_gcn(p['dense_update'], union_dense, p['dn_near'])

    dn4 = union_dense.reshape(B, union_dense.shape[1], n_stk, n_stk_pnt)
    if p['sample_type'] == 'down_sample':
        dn4 = conv1x3_s2_p1(dn4, *p['sample'])
    elif p['sample_type'] == 'up_sample':
        dn4 = conv_transpose_1x4_s2_p1(dn4, *p['sample'])
    union_dense = dn4.reshape(B, dn4.shape[1], -1)

    union_sparse = apply_timemerge(p['tm_sp'], union_sparse, time_emb)
    union_dense = apply_timemerge(p['tm_dn'], union_dense, time_emb)
    return union_sparse, union_dense


# ------------------------------------------------------------------ full UNet

def make_sdgraph_unet(pg, channel_in, channel_out, n_stk, n_stk_pnt):
    sparse_l0, sparse_l1, sparse_l2 = 32, 128, 512
    dense_l0, dense_l1, dense_l2 = 16, 64, 256
    global_dim, time_emb_dim = 1024, 256
    params = {}
    params['time_encode'] = make_timeencode(pg, time_emb_dim)
    params['point_to_sparse'] = make_point_to_sparse(pg, channel_in, sparse_l0, time_emb_dim)
    params['point_to_dense'] = make_point_to_dense(pg, channel_in, dense_l0, time_emb_dim, 10)
    params['sd_down1'] = make_sd_encoder(pg, sparse_l0, sparse_l1, dense_l0, dense_l1,
                                         n_stk, n_stk_pnt, 2, 10, 'down_sample', time_emb_dim)
    params['sd_down2'] = make_sd_encoder(pg, sparse_l1, sparse_l2, dense_l1, dense_l2,
                                         n_stk, n_stk_pnt // 2, 2, 10, 'down_sample', time_emb_dim)
    global_in = sparse_l2 + dense_l2
    params['global_linear'] = make_fc(
        pg, [global_in, int((global_in * global_dim) ** 0.5), global_dim])
    params['sd_up2'] = make_sd_encoder(pg, global_dim + sparse_l2, sparse_l2,
                                       global_dim + dense_l2, dense_l2,
                                       n_stk, n_stk_pnt // 4, 2, 10, 'up_sample', time_emb_dim)
    params['sd_up1'] = make_sd_encoder(pg, sparse_l1 + sparse_l2, sparse_l1,
                                       dense_l1 + dense_l2, dense_l1,
                                       n_stk, n_stk_pnt // 2, 2, 10, 'up_sample', time_emb_dim)
    final_in = dense_l0 + sparse_l0 + dense_l1 + sparse_l1 + channel_in
    params['final_linear'] = make_fc(
        pg, [final_in, int((channel_out * final_in) ** 0.5), channel_out])
    return params


def sdgraph_unet_forward(params, xy, time, n_stk, n_stk_pnt):
    bs, channel_in, n_point = xy.shape
    assert n_point == n_stk * n_stk_pnt

    time_emb = apply_timeencode(params['time_encode'], time)

    sparse_up0 = apply_point_to_sparse(params['point_to_sparse'], xy, time_emb, n_stk, n_stk_pnt)
    dense_up0 = apply_point_to_dense(params['point_to_dense'], xy, time_emb)

    sparse_up1, dense_up1 = apply_sd_encoder(params['sd_down1'], sparse_up0, dense_up0, time_emb)
    sparse_up2, dense_up2 = apply_sd_encoder(params['sd_down2'], sparse_up1, dense_up1, time_emb)

    sp_glo = sparse_up2.max(axis=2)
    dn_glo = dense_up2.max(axis=2)
    fea_global = jnp.concatenate([sp_glo, dn_glo], axis=1)
    fea_global = apply_fc_linear(params['global_linear'], fea_global, final_proc=True)

    sparse_down2 = jnp.concatenate(
        [sparse_up2,
         jnp.broadcast_to(fea_global[:, :, None], (bs, fea_global.shape[1], n_stk))], axis=1)
    n_dn2 = dense_up2.shape[2]
    dense_down2 = jnp.concatenate(
        [dense_up2,
         jnp.broadcast_to(fea_global[:, :, None], (bs, fea_global.shape[1], n_dn2))], axis=1)

    sparse_down1, dense_down1 = apply_sd_encoder(params['sd_up2'], sparse_down2, dense_down2, time_emb)
    sparse_down1 = jnp.concatenate([sparse_down1, sparse_up1], axis=1)
    dense_down1 = jnp.concatenate([dense_down1, dense_up1], axis=1)

    sparse_down0, dense_down0 = apply_sd_encoder(params['sd_up1'], sparse_down1, dense_down1, time_emb)
    sparse_graph = jnp.concatenate([sparse_down0, sparse_up0], axis=1)
    dense_graph = jnp.concatenate([dense_down0, dense_up0], axis=1)

    sparse_exp = jnp.broadcast_to(sparse_graph[:, :, :, None],
                                  (bs, sparse_graph.shape[1], n_stk, n_stk_pnt))
    dense4 = dense_graph.reshape(bs, dense_graph.shape[1], n_stk, n_stk_pnt)
    xy4 = xy.reshape(bs, channel_in, n_stk, n_stk_pnt)
    dense_graph = jnp.concatenate([dense4, sparse_exp, xy4], axis=1)
    dense_graph = dense_graph.reshape(bs, dense_graph.shape[1], n_stk * n_stk_pnt)

    noise = apply_fc_conv(params['final_linear'], dense_graph, final_proc=False)
    return noise


# ------------------------------------------------------------------ main

if __name__ == "__main__":
    bs, channel_in, channel_out = 2, 2, 2
    n_stk, n_stk_pnt = 4, 16           # n_stk_pnt must be >=5 and divisible by 4
    n_point = n_stk * n_stk_pnt

    key = jax.random.PRNGKey(0)
    k1, k2 = jax.random.split(key)
    xy = jax.random.normal(k1, (bs, channel_in, n_point), jnp.float32)
    time = jax.random.uniform(k2, (bs,), jnp.float32, 0.0, 100.0)

    pg = ParamGen(seed=0)
    params = make_sdgraph_unet(pg, channel_in, channel_out, n_stk, n_stk_pnt)

    out = sdgraph_unet_forward(params, xy, time, n_stk, n_stk_pnt)
    out = jax.block_until_ready(out)
    assert out.shape == (bs, channel_out, n_point), out.shape
    print("KERNEL_OK")
</pallas_src>

<mosaic_0001>
module attributes {stable_mosaic.version = 11 : i64} {
  func.func @kernel(%arg0: i32, %arg1: memref<8x6xbf16, #tpu.memory_space<vmem>>, %arg2: memref<8x1xf32, #tpu.memory_space<vmem>>, %arg3: memref<6x112xbf16, #tpu.memory_space<vmem>>, %arg4: memref<8x112xf32, #tpu.memory_space<vmem>>) attributes {dimension_semantics = [#tpu.dimension_semantics<parallel>], iteration_bounds = array<i64: 1>, scalar_prefetch = 0 : i64, scratch_operands = 0 : i64, tpu.core_type = #tpu.core_type<tc>, window_params = [{transform_indices = @transform_0, window_bounds = array<i64: 8, 6>}, {transform_indices = @transform_1, window_bounds = array<i64: 8, 1>}, {pipeline_mode = #tpu.pipeline_mode<synchronous>, transform_indices = @transform_2, window_bounds = array<i64: 6, 112>}, {transform_indices = @transform_3, window_bounds = array<i64: 8, 112>}]} {
    %c0 = arith.constant 0 : index
    %c0_0 = arith.constant 0 : index
    %0 = vector.load %arg1[%c0, %c0_0] : memref<8x6xbf16, #tpu.memory_space<vmem>>, vector<8x6xbf16>
    %c0_1 = arith.constant 0 : index
    %c0_2 = arith.constant 0 : index
    %1 = vector.load %arg3[%c0_1, %c0_2] : memref<6x112xbf16, #tpu.memory_space<vmem>>, vector<6x112xbf16>
    %cst = arith.constant dense<0.000000e+00> : vector<8x112xf32>
    %2 = tpu.matmul %0, %1, %cst {dimension_numbers = #tpu.dot_dimension_numbers<[1], [0], [0], [1], [0, 0, 1, 1], [], []>} : vector<8x6xbf16>, vector<6x112xbf16>, vector<8x112xf32> -> vector<8x112xf32>
    %c0_3 = arith.constant 0 : index
    %c0_4 = arith.constant 0 : index
    %3 = vector.load %arg2[%c0_3, %c0_4] : memref<8x1xf32, #tpu.memory_space<vmem>>, vector<8x1xf32>
    %4 = vector.broadcast %3 : vector<8x1xf32> to vector<8x112xf32>
    %5 = arith.addf %2, %4 : vector<8x112xf32>
    %cst_5 = arith.constant 5.000000e-01 : f32
    %6 = vector.broadcast %cst_5 : f32 to vector<8x112xf32>
    %7 = arith.mulf %6, %5 : vector<8x112xf32>
    %cst_6 = arith.constant 4.471500e-02 : f32
    %8 = vector.broadcast %cst_6 : f32 to vector<8x112xf32>
    %9 = arith.mulf %8, %5 : vector<8x112xf32>
    %10 = arith.mulf %9, %5 : vector<8x112xf32>
    %11 = arith.mulf %10, %5 : vector<8x112xf32>
    %12 = arith.addf %5, %11 : vector<8x112xf32>
    %cst_7 = arith.constant 0.797884583 : f32
    %13 = vector.broadcast %cst_7 : f32 to vector<8x112xf32>
    %14 = arith.mulf %13, %12 : vector<8x112xf32>
    %15 = math.tanh %14 : vector<8x112xf32>
    %cst_8 = arith.constant 1.000000e+00 : f32
    %16 = vector.broadcast %cst_8 : f32 to vector<8x112xf32>
    %17 = arith.addf %16, %15 : vector<8x112xf32>
    %18 = arith.mulf %7, %17 : vector<8x112xf32>
    %c0_9 = arith.constant 0 : index
    %c0_10 = arith.constant 0 : index
    %19 = vector.load %arg4[%c0_9, %c0_10] : memref<8x112xf32, #tpu.memory_space<vmem>>, vector<8x112xf32>
    tpu.vector_store %arg4[%c0_9, %c0_10], %18 {strides = array<i32>} : memref<8x112xf32, #tpu.memory_space<vmem>>, vector<8x112xf32>,
    return
  }
  func.func @transform_0(%arg0: i32) -> (i32, i32) {
    %c0_i32 = arith.constant 0 : i32
    %c0_i32_0 = arith.constant 0 : i32
    return %arg0, %c0_i32 : i32, i32
  }
  func.func @transform_1(%arg0: i32) -> (i32, i32) {
    %c0_i32 = arith.constant 0 : i32
    %c0_i32_0 = arith.constant 0 : i32
    return %arg0, %c0_i32 : i32, i32
  }
  func.func @transform_2(%arg0: i32) -> (i32, i32) {
    %c0_i32 = arith.constant 0 : i32
    %c0_i32_0 = arith.constant 0 : i32
    %c0_i32_1 = arith.constant 0 : i32
    return %c0_i32, %c0_i32_0 : i32, i32
  }
  func.func @transform_3(%arg0: i32) -> (i32, i32) {
    %c0_i32 = arith.constant 0 : i32
    %c0_i32_0 = arith.constant 0 : i32
    return %arg0, %c0_i32 : i32, i32
  }
}

</mosaic_0001>

<bundles_post_ra>
// kernel: tpu_custom_call.1
= control target key start
LH: loop header
LB: loop body
LE: loop exit
PB: predicated region body
PF: predicated region fallthrough
CT: control target
= control target key end

     0   :  { %vm28_vm0 = vcmask 1042432   ;;  %v135_v1 = vmov 0.0   ;;  %vm136_vm1 = vmmov 0   ;;  %vm24_vm2 = vcmask 48128   ;;  %s171_s0 = inlined_call_operand.vmem [shape: bf16[8,6], index: 0, kind: input, shape index: {}]   ;;  %s172_s1 = inlined_call_operand.vmem [shape: f32[8,1], index: 1, kind: input, shape index: {}]   ;;  %s173_s2 = inlined_call_operand.vmem [shape: bf16[6,112], index: 2, kind: input, shape index: {}]   ;;  %s174_s3 = inlined_call_operand.hbm [shape: f32[8,112], index: 3, kind: output, shape index: {}]  }
   0x1   :  { %v17_v0 = vld [vmem:[%s173_s2] sm:$0x7]  ;;  %100 = vmatprep.subr.bf16.mxu0 %v135_v1  ;;  %102 = vmatprep.mubr.msk.bf16.mxu0 %vm136_vm1, %v135_v1  ;;  %v137_v5 = vmov 0  }
   0x2   :  { %v30_v2 = vsel %vm28_vm0, %v17_v0, 0  ;;  %v18_v3 = vld [vmem:[%s172_s1] sm:$0xff]  ;;  %110 = vset.pattern.permute.xlu0 %v137_v5 }
   0x3   :  { %101 = vmatpush3.bf16.msra.mxu0 %v30_v2  ;;  %v16_v4 = vld [vmem:[%s171_s0] sm:$0xf] }
   0x4   :  { %8 = vsyncpa [#allocation3], 0  ;;  %21 = vperm.xlu0 %110, %v18_v3   ;;  %s138_s0 = smov [#allocation2]   ;;  %vm81_vm3 = vcmask 916480  }
   0x5   :  { %s89_s1 = sshll.u32 %s138_s0, 4  ;;  %s90_s1 = int_to_ptr.vmem [resolvable:$true] %s89_s1 }
   0x6   :  { %103 = vmatmul.mubr.msk.bf16.vlgmr.msra.gmra.mxu0 %vm24_vm2, %v16_v4  ;;  %s113_s2 = scalar_lea.vmem %s90_s1, 128  ;;  %p118_p1 = scmp.lt.s32.totalorder %s90_s1, %s90_s1 }
   0x7   :  { %p114_p0 = scmp.ne.s32.totalorder %s90_s1, %s113_s2  ;;  %p119_p2 = scmp.lt.s32.totalorder %s113_s2, %s113_s2 }
   0x9   :  { %p120_p3 = por %p119_p2, %p118_p1 }
   0xb   :  { %p121_p4 = pnand %p120_p3, %p114_p0 }
  0x7f   :  { %v22_v6 = vpop.permute.xlu0 %21 }
  0xc6   :  { %v66_v7 = vpop.f32.mrf.mxu0 }
  0xc7   :  { %v67_v8 = vadd.f32 %v66_v7, %v22_v6 }
  0xc8   :  { %v104_v9 = vpop.f32.mrf.mxu0 }
  0xc9   :  { %v73_v10 = vmul.f32 0.044715, %v67_v8  ;;  %v72_v18 = vmul.f32 0.5, %v67_v8 }
  0xca   :  { %v69_v11 = vpop.f32.mrf.mxu0 }
  0xcb   :  { %v74_v12 = vmul.f32 %v73_v10, %v67_v8 }
  0xcc   :  { %v105_v13 = vpop.f32.mrf.mxu0 }
  0xcd   :  { %v75_v14 = vmul.f32 %v74_v12, %v67_v8 }
  0xcf   :  { %v76_v15 = vadd.f32 %v75_v14, %v67_v8 }
  0xd1   :  { %v77_v16 = vmul.f32 0.7978846, %v76_v15 }
  0xd3   :  { %111 = vtanh.f32 %v77_v16 }
  0xe0   :  { %v112_v17 = vpop.eup %111 }
  0xe1   :  { %v79_v19 = vadd.f32 1.0, %v112_v17 }
  0xe3   :  { %v80_v20 = vmul.f32 %v79_v19, %v72_v18 }
  0xe5   :  { %82 = vst.msk [vmem:[#allocation2] sm:$0xff] %vm81_vm3, %v80_v20 }
  0xe6   :  { %124 = shalt.err (!%p121_p4)
}
  0xe7   :  { %92 = dma.vmem_to_hbm [thread:$0]  %s90_s1, 128, %s174_s3, [#allocation3]  }
  0xe8   :  { %133 = dma.done.wait [#allocation3], 128  }
  0xe9   :  { %134 = vsyncadd [#allocation3], 4294967168 }
  0xea   :  { %96 = vsyncpa [#allocation3], 1 }

</bundles_post_ra>
